<compile_context>
chip_gen: v5e
topology: v5e:2x2
jax: 0.10.0
libtpu: 0.0.40
codegen_flags: <defaults>
</compile_context>

<pallas_src>
import jax
import jax.numpy as jnp
from jax.experimental import pallas as pl
from jax.experimental.pallas import tpu as pltpu


# ----------------------------------------------------------------------------
# Pallas kernel: fused SE block for one batch element.
# ----------------------------------------------------------------------------
def _se_kernel(x_ref, w1_ref, w2_ref, o_ref):
    x = x_ref[0]                                    # (HW, C), f32, VMEM-resident
    y = jnp.mean(x, axis=0, keepdims=True)          # (1, C)   == AdaptiveAvgPool2d(1)
    h = jnp.maximum(
        jnp.dot(y, w1_ref[...], preferred_element_type=jnp.float32), 0.0)   # (1, Cr)
    s = jax.nn.sigmoid(
        jnp.dot(h, w2_ref[...], preferred_element_type=jnp.float32))        # (1, C)
    o_ref[0] = (x * s).astype(o_ref.dtype)          # broadcast gate over all pixels


def seblock_forward(x_nchw, w1t, w2t):
    """x_nchw: (B, C, H, W); w1t: (C, C//r); w2t: (C//r, C).  Returns NCHW."""
    B, C, H, W = x_nchw.shape
    Cr = w1t.shape[1]
    HW = H * W

    # layout change NCHW -> (B, HW, C) once at the boundary (C lane-dense).
    xr = jnp.transpose(x_nchw, (0, 2, 3, 1)).reshape(B, HW, C)

    out = pl.pallas_call(
        _se_kernel,
        out_shape=jax.ShapeDtypeStruct((B, HW, C), x_nchw.dtype),
        grid_spec=pltpu.PrefetchScalarGridSpec(
            num_scalar_prefetch=0,
            grid=(B,),
            in_specs=[
                pl.BlockSpec((1, HW, C), lambda b: (b, 0, 0)),
                pl.BlockSpec((C, Cr), lambda b: (0, 0)),
                pl.BlockSpec((Cr, C), lambda b: (0, 0)),
            ],
            out_specs=pl.BlockSpec((1, HW, C), lambda b: (b, 0, 0)),
        ),
        compiler_params=pltpu.CompilerParams(
            dimension_semantics=("parallel",)),
    )(xr, w1t, w2t)

    return jnp.transpose(out.reshape(B, H, W, C), (0, 3, 1, 2))


# ----------------------------------------------------------------------------
# Pure-JAX reference (mirrors the PyTorch module exactly).
# ----------------------------------------------------------------------------
def seblock_ref(x, W1, W2):
    y = jnp.mean(x, axis=(2, 3))                    # (B, C)
    h = jnp.maximum(y @ W1.T, 0.0)                  # Linear(C, C//r, bias=False) + ReLU
    s = jax.nn.sigmoid(h @ W2.T)                    # Linear(C//r, C, bias=False) + Sigmoid
    return x * s[:, :, None, None]


# ----------------------------------------------------------------------------
if __name__ == "__main__":
    key = jax.random.PRNGKey(0)
    kx, k1, k2 = jax.random.split(key, 3)

    B, C, H, W = 2, 256, 16, 16
    reduction = 16
    Cr = C // reduction

    x = jax.random.normal(kx, (B, C, H, W), jnp.float32)
    # PyTorch Linear weight layout: (out_features, in_features)
    W1 = jax.random.normal(k1, (Cr, C), jnp.float32) / jnp.sqrt(C)    # Linear(C, C//16)
    W2 = jax.random.normal(k2, (C, Cr), jnp.float32) / jnp.sqrt(Cr)   # Linear(C//16, C)

    # Pre-transpose once into the kernel layout (no per-forward weight glue).
    w1t = jnp.asarray(W1.T)   # (C, Cr)
    w2t = jnp.asarray(W2.T)   # (Cr, C)

    fwd = jax.jit(seblock_forward)
    out = jax.block_until_ready(fwd(x, w1t, w2t))

    ref = seblock_ref(x, W1, W2)
    assert out.shape == (B, C, H, W)
    assert bool(jnp.all(jnp.isfinite(out)))
    assert float(jnp.max(jnp.abs(out - ref))) < 1e-4
    print("KERNEL_OK")
</pallas_src>

<mosaic_0001>
module attributes {stable_mosaic.version = 11 : i64} {
  func.func @_se_kernel(%arg0: i32, %arg1: memref<1x256x256xf32, #tpu.memory_space<vmem>>, %arg2: memref<256x16xf32, #tpu.memory_space<vmem>>, %arg3: memref<16x256xf32, #tpu.memory_space<vmem>>, %arg4: memref<1x256x256xf32, #tpu.memory_space<vmem>>) attributes {dimension_semantics = [#tpu.dimension_semantics<parallel>], iteration_bounds = array<i64: 2>, scalar_prefetch = 0 : i64, scratch_operands = 0 : i64, tpu.core_type = #tpu.core_type<tc>, window_params = [{transform_indices = @transform_0, window_bounds = array<i64: 1, 256, 256>}, {pipeline_mode = #tpu.pipeline_mode<synchronous>, transform_indices = @transform_1, window_bounds = array<i64: 256, 16>}, {pipeline_mode = #tpu.pipeline_mode<synchronous>, transform_indices = @transform_2, window_bounds = array<i64: 16, 256>}, {transform_indices = @transform_3, window_bounds = array<i64: 1, 256, 256>}]} {
    %c0 = arith.constant 0 : index
    %c0_0 = arith.constant 0 : index
    %c0_1 = arith.constant 0 : index
    %0 = vector.load %arg1[%c0, %c0_0, %c0_1] : memref<1x256x256xf32, #tpu.memory_space<vmem>>, vector<1x256x256xf32>
    %1 = vector.shape_cast %0 : vector<1x256x256xf32> to vector<256x256xf32>
    %cst = arith.constant dense<0.000000e+00> : vector<256xf32>
    %2 = vector.multi_reduction <add>, %1, %cst [0] : vector<256x256xf32> to vector<256xf32>
    %3 = vector.shape_cast %2 : vector<256xf32> to vector<1x256xf32>
    %cst_2 = arith.constant 2.560000e+02 : f32
    %4 = vector.broadcast %cst_2 : f32 to vector<1x256xf32>
    %5 = arith.divf %3, %4 : vector<1x256xf32>
    %c0_3 = arith.constant 0 : index
    %c0_4 = arith.constant 0 : index
    %6 = vector.load %arg2[%c0_3, %c0_4] : memref<256x16xf32, #tpu.memory_space<vmem>>, vector<256x16xf32>
    %cst_5 = arith.constant dense<0.000000e+00> : vector<1x16xf32>
    %7 = tpu.matmul %5, %6, %cst_5 {dimension_numbers = #tpu.dot_dimension_numbers<[1], [0], [0], [1], [0, 0, 1, 1], [], []>} : vector<1x256xf32>, vector<256x16xf32>, vector<1x16xf32> -> vector<1x16xf32>
    %cst_6 = arith.constant 0.000000e+00 : f32
    %8 = vector.broadcast %cst_6 : f32 to vector<1x16xf32>
    %9 = arith.maximumf %7, %8 : vector<1x16xf32>
    %c0_7 = arith.constant 0 : index
    %c0_8 = arith.constant 0 : index
    %10 = vector.load %arg3[%c0_7, %c0_8] : memref<16x256xf32, #tpu.memory_space<vmem>>, vector<16x256xf32>
    %cst_9 = arith.constant dense<0.000000e+00> : vector<1x256xf32>
    %11 = tpu.matmul %9, %10, %cst_9 {dimension_numbers = #tpu.dot_dimension_numbers<[1], [0], [0], [1], [0, 0, 1, 1], [], []>} : vector<1x16xf32>, vector<16x256xf32>, vector<1x256xf32> -> vector<1x256xf32>
    %12 = arith.negf %11 : vector<1x256xf32>
    %13 = math.exp %12 : vector<1x256xf32>
    %cst_10 = arith.constant 1.000000e+00 : f32
    %14 = vector.broadcast %cst_10 : f32 to vector<1x256xf32>
    %15 = arith.addf %14, %13 : vector<1x256xf32>
    %16 = arith.divf %14, %15 : vector<1x256xf32>
    %17 = vector.broadcast %16 : vector<1x256xf32> to vector<256x256xf32>
    %18 = arith.mulf %1, %17 : vector<256x256xf32>
    %c0_11 = arith.constant 0 : index
    %c0_12 = arith.constant 0 : index
    %c0_13 = arith.constant 0 : index
    %19 = vector.load %arg4[%c0_11, %c0_12, %c0_13] : memref<1x256x256xf32, #tpu.memory_space<vmem>>, vector<1x256x256xf32>
    %20 = vector.shape_cast %19 : vector<1x256x256xf32> to vector<256x256xf32>
    %21 = vector.shape_cast %18 : vector<256x256xf32> to vector<1x256x256xf32>
    tpu.vector_store %arg4[%c0_11, %c0_12, %c0_13], %21 {strides = array<i32>} : memref<1x256x256xf32, #tpu.memory_space<vmem>>, vector<1x256x256xf32>,
    return
  }
  func.func @transform_0(%arg0: i32) -> (i32, i32, i32) {
    %c0_i32 = arith.constant 0 : i32
    %c0_i32_0 = arith.constant 0 : i32
    %c0_i32_1 = arith.constant 0 : i32
    return %arg0, %c0_i32, %c0_i32_0 : i32, i32, i32
  }
  func.func @transform_1(%arg0: i32) -> (i32, i32) {
    %c0_i32 = arith.constant 0 : i32
    %c0_i32_0 = arith.constant 0 : i32
    %c0_i32_1 = arith.constant 0 : i32
    return %c0_i32, %c0_i32_0 : i32, i32
  }
  func.func @transform_2(%arg0: i32) -> (i32, i32) {
    %c0_i32 = arith.constant 0 : i32
    %c0_i32_0 = arith.constant 0 : i32
    %c0_i32_1 = arith.constant 0 : i32
    return %c0_i32, %c0_i32_0 : i32, i32
  }
  func.func @transform_3(%arg0: i32) -> (i32, i32, i32) {
    %c0_i32 = arith.constant 0 : i32
    %c0_i32_0 = arith.constant 0 : i32
    %c0_i32_1 = arith.constant 0 : i32
    return %arg0, %c0_i32, %c0_i32_0 : i32, i32, i32
  }
}

</mosaic_0001>

<bundles_post_ra>
// kernel: seblock_forward.1
= control target key start
LH: loop header
LB: loop body
LE: loop exit
PB: predicated region body
PF: predicated region fallthrough
CT: control target
= control target key end

     0   :  { %8 = vsyncpa [#allocation3], 0  ;;  %s1623_s0 = inlined_call_operand.hbm [shape: f32[2,256,256], index: 0, kind: input, shape index: {}]   ;;  %s1624_s1 = inlined_call_operand.vmem [shape: f32[256,16], index: 1, kind: input, shape index: {}]   ;;  %s1625_s2 = inlined_call_operand.vmem [shape: f32[16,256], index: 2, kind: input, shape index: {}]   ;;  %s1626_s3 = inlined_call_operand.hbm [shape: f32[2,256,256], index: 3, kind: output, shape index: {}]  }
   0x1   :  { %10 = vsyncpa [#allocation3 + $0x1], 0 }
   0x2   :  { %11 = vsyncpa [#allocation4], 0 }
   0x3   :  { %13 = vsyncpa [#allocation4 + $0x1], 0  ;;  %s920_s12 = smov 0   ;;  %s922_s13 = smov 0  }
   0x4   :  { %s924_s14 = smov 0   ;;  %s926_s15 = smov 0  }
   0x5 LB: > { %s941_s16 = sadd.s32 4294967295, %s893_s15   ;;  %s716_s17 = sadd.s32 4294967294, %s893_s15   ;;  %s893_s15 = sphi %s926_s15, %s1693_s15   ;;  %s889_s14 = sphi %s924_s14, %s1692_s14   ;;  %s885_s13 = sphi %s922_s13, %s1691_s13   ;;  %s881_s12 = sphi %s920_s12, %s1690_s12  }
   0x6   : > { %s945_s18 = sadd.s32 1, %s893_s15   ;;  %s26_s19 = sadd.s32 1, %s889_s14 }
   0x7   : > { %s23_s20 = ssub.s32 %s893_s15, %s945_s18  ;;  %p33_p0 = scmp.ne.s32.totalorder %s889_s14, %s885_s13 }
   0x8   : > { %p24_p1 = scmp.eq.s32.totalorder %s23_s20, 0  ;;  %p34_p2 = scmp.eq.s32.totalorder %s893_s15, 0 }
   0x9   : > { %p39_p3 = scmp.ne.s32.totalorder %s885_s13, %s881_s12  ;;  %p40_p4 = scmp.eq.s32.totalorder %s941_s16, 0 }
   0xa   : > { %s957_s21 = scalar_select %p24_p1, %s889_s14, %s26_s19  }
   0xb   : > { %p959_p5 = por %p34_p2, %p33_p0  ;;  %p963_p6 = por %p40_p4, %p39_p3 }
   0xc   : > { %p105_p7 = scmp.eq.s32.totalorder %s941_s16, 1  ;;  %p111_p8 = scmp.eq.s32.totalorder %s716_s17, 1 }
   0xd   : > { %p748_p10 = scmp.lt.s32.totalorder %s893_s15, 2  ;;  %s137_s26 = sand.u32 1, %s889_s14  }
   0xe   : > { %p970_p11 = por %p105_p7, %p33_p0  ;;  %p974_p12 = por %p111_p8, %p39_p3 }
   0xf   : > { %s734_s27 = sshll.u32 %s893_s15, 9  ;;  %s719_s28 = sshll.u32 %s137_s26, 9 }
  0x10   : > { %s146_s4 = scalar_lea.hbm %s1623_s0, %s734_s27  ;;  %s141_s6 = scalar_lea.vmem [#allocation2], %s719_s28 }
  0x11   : > { %s147_s5 = sshll.u32 %s146_s4, 4  ;;  %s149_s7 = sshll.u32 %s141_s6, 4  ;;  %s148_s5 = int_to_ptr.hbm [resolvable:$true] %s147_s5  ;;  %s150_s7 = int_to_ptr.vmem [resolvable:$true] %s149_s7 }
  0x12   : > { %p985_p13 = pnand %p748_p10, %p959_p5  ;;  %p722_p0 = scmp.ge.s32.totalorder %s893_s15, 1 }
  0x13   : > { %p157_p1 = scmp.lt.s32.totalorder %s893_s15, 3  ;;  %s138_s9 = scalar_lea.sflag [#allocation3], %s137_s26 }
  0x14   : > { %s797_s10 = sshra.s32 %s148_s5, 4  ;;  %p801_p3 = pneg %p985_p13  ;;  %s798_s10 = int_to_ptr.hbm [resolvable:$true] %s797_s10 }
  0x15   : > { %s799_s11 = scalar_lea.hbm %s798_s10, 512  ;;  %s804_s20 = scalar_lea.hbm %s1623_s0, 1024 }
  0x16   : > { %p800_p2 = scmp.ne.s32.totalorder %s798_s10, %s799_s11  ;;  %p805_p5 = scmp.lt.s32.totalorder %s798_s10, %s1623_s0 }
  0x17   : > { %p806_p8 = scmp.lt.s32.totalorder %s804_s20, %s799_s11 }
  0x18   : > { %p802_p4 = pnand %p801_p3, %p800_p2 }
  0x19   : > { %p807_p10 = por %p806_p8, %p805_p5 }
  0x1a   : > { %p803_p7 = pneg %p802_p4 }
  0x1c   : > { %p808_p9 = pnand %p807_p10, %p803_p7 }
  0x1e   : > { %811 = shalt.err (!%p808_p9)
}
  0x1f   : > { %s895_s26 = smov 256   ;;  %s896_s28 = smov 16  }
  0x20   : > { %743 = dma.hbm_to_vmem [thread:$0]  (!%p985_p13), %s148_s5, 8192, %s150_s7, %s138_s9, %s895_s26, %s895_s26, %s896_s28  }
  0x21   : > { %p158_p2 = pnand %p722_p0, %p157_p1 }
  0x23   : > { %161 = sbr.rel (%p158_p2) target bundleno = 493 (0x1ed), region = 32 }
  0x28   : > { %s1006_s29 = sand.u32 1, %s885_s13  }
  0x29   : > { %s723_s30 = sshll.u32 %s1006_s29, 9  ;;  %s164_s4 = scalar_lea.sflag [#allocation3], %s1006_s29 }
  0x2a   : > { %s1012_s6 = scalar_lea.vmem [#allocation2], %s723_s30 }
  0x2b   : > { %872 = dma.done.wait (%p963_p6), %s164_s4, 8192  }
  0x2c   : > { %874 = vsyncadd (%p963_p6), %s164_s4, 4294959104  ;;  %v353_v0 = vld [vmem:[%s1624_s1 + $0x78] sm:$0xff]  ;;  %v352_v2 = vld [vmem:[%s1624_s1 + $0x70] sm:$0xff]  ;;  %vm415_vm1 = vcmask 130048   ;;  %s1399_s27 = scalar_lea.vmem [#allocation5], %s723_s30  ;;  %s735_s30 = sshll.u32 %s941_s16, 9 }
  0x2d   : > { %v369_v1 = vld [vmem:[%s1624_s1 + $0xf8] sm:$0xff]  ;;  %370 = vmatpush.msra.mxu0 %v353_v0  ;;  %v368_v3 = vld [vmem:[%s1624_s1 + $0xf0] sm:$0xff]  ;;  %v351_v4 = vld [vmem:[%s1624_s1 + $0x68] sm:$0xff]  ;;  %s639_s4 = scalar_lea.hbm %s1626_s3, %s735_s30  ;;  %s640_s16 = sshll.u32 %s1399_s27, 4  ;;  %s641_s16 = int_to_ptr.vmem [resolvable:$true] %s640_s16 }
  0x2e   : > { %390 = vmatpush.msra.mxu1 %v369_v1  ;;  %v367_v5 = vld [vmem:[%s1624_s1 + $0xe8] sm:$0xff]  ;;  %v350_v6 = vld [vmem:[%s1624_s1 + $0x60] sm:$0xff]  ;;  %v349_v8 = vld [vmem:[%s1624_s1 + $0x58] sm:$0xff]  ;;  %s642_s5 = sshll.u32 %s639_s4, 4  ;;  %s628_s7 = scalar_lea.sflag [#allocation4], %s1006_s29  ;;  %s643_s5 = int_to_ptr.hbm [resolvable:$true] %s642_s5 }
  0x2f   : > { %371 = vmatpush.msra.mxu0 %v352_v2  ;;  %v366_v7 = vld [vmem:[%s1624_s1 + $0xe0] sm:$0xff]  ;;  %v365_v9 = vld [vmem:[%s1624_s1 + $0xd8] sm:$0xff]  ;;  %v348_v10 = vld [vmem:[%s1624_s1 + $0x50] sm:$0xff]  ;;  %s841_s8 = sshra.s32 %s643_s5, 4  ;;  %s847_s11 = scalar_lea.hbm %s1626_s3, 1024  ;;  %s842_s8 = int_to_ptr.hbm [resolvable:$true] %s841_s8 }
  0x30   : > { %391 = vmatpush.msra.mxu1 %v368_v3  ;;  %v364_v11 = vld [vmem:[%s1624_s1 + $0xd0] sm:$0xff]  ;;  %v347_v12 = vld [vmem:[%s1624_s1 + $0x48] sm:$0xff]  ;;  %v1061_v14 = vld [vmem:[%s1012_s6] sm:$0xff]  ;;  %s843_s9 = scalar_lea.hbm %s842_s8, 512  ;;  %p848_p0 = scmp.lt.s32.totalorder %s842_s8, %s1626_s3 }
  0x31   : > { %372 = vmatpush.msra.mxu0 %v351_v4  ;;  %v363_v13 = vld [vmem:[%s1624_s1 + $0xc8] sm:$0xff]  ;;  %v1064_v15 = vld [vmem:[%s1012_s6 + $0x10] sm:$0xff]  ;;  %v1067_v16 = vld [vmem:[%s1012_s6 + $0x20] sm:$0xff]  ;;  %p844_p6 = scmp.ne.s32.totalorder %s842_s8, %s843_s9  ;;  %p849_p1 = scmp.lt.s32.totalorder %s847_s11, %s843_s9 }
  0x32   : > { %392 = vmatpush.msra.mxu1 %v367_v5  ;;  %v346_v17 = vld [vmem:[%s1624_s1 + $0x40] sm:$0xff]  ;;  %v255_v19 = vadd.f32 %v1064_v15, %v1061_v14  ;;  %v1078_v20 = vld [vmem:[%s1012_s6 + $0x30] sm:$0xff]  ;;  %v345_v21 = vld [vmem:[%s1624_s1 + $0x38] sm:$0xff] }
  0x33   : > { %373 = vmatpush.msra.mxu0 %v350_v6  ;;  %v362_v18 = vld [vmem:[%s1624_s1 + $0xc0] sm:$0xff]  ;;  %v361_v22 = vld [vmem:[%s1624_s1 + $0xb8] sm:$0xff]  ;;  %v344_v25 = vld [vmem:[%s1624_s1 + $0x30] sm:$0xff]  ;;  %p845_p9 = pnand %p844_p6, %p970_p11  ;;  %p850_p3 = por %p849_p1, %p848_p0 }
  0x34   : > { %393 = vmatpush.msra.mxu1 %v366_v7  ;;  %v256_v23 = vadd.f32 %v255_v19, %v1067_v16  ;;  %v1088_v24 = vld [vmem:[%s1012_s6 + $0x40] sm:$0xff]  ;;  %v360_v26 = vld [vmem:[%s1624_s1 + $0xb0] sm:$0xff]  ;;  %v343_v29 = vld [vmem:[%s1624_s1 + $0x28] sm:$0xff] }
  0x35   : > { %374 = vmatpush.msra.mxu0 %v349_v8  ;;  %v1098_v28 = vld [vmem:[%s1012_s6 + $0x50] sm:$0xff]  ;;  %v359_v30 = vld [vmem:[%s1624_s1 + $0xa8] sm:$0xff]  ;;  %v1108_v32 = vld [vmem:[%s1012_s6 + $0x60] sm:$0xff]  ;;  %p846_p13 = pneg %p845_p9 }
  0x36   : > { %394 = vmatpush.msra.mxu1 %v365_v9  ;;  %v257_v27 = vadd.f32 %v256_v23, %v1078_v20  ;;  %v342_v33 = vld [vmem:[%s1624_s1 + $0x20] sm:$0xff]  ;;  %v1118_v36 = vld [vmem:[%s1012_s6 + $0x70] sm:$0xff]  ;;  %v1121_v37 = vld [vmem:[%s1012_s6 + $0x8] sm:$0xff] }
  0x37   : > { %375 = vmatpush.msra.mxu0 %v348_v10  ;;  %v358_v34 = vld [vmem:[%s1624_s1 + $0xa0] sm:$0xff]  ;;  %v1124_v38 = vld [vmem:[%s1012_s6 + $0x18] sm:$0xff]  ;;  %v1134_v42 = vld [vmem:[%s1012_s6 + $0x28] sm:$0xff]  ;;  %p851_p4 = pnand %p850_p3, %p846_p13 }
  0x38   : > { %395 = vmatpush.msra.mxu1 %v364_v11  ;;  %v258_v31 = vadd.f32 %v257_v27, %v1088_v24  ;;  %v341_v39 = vld [vmem:[%s1624_s1 + $0x18] sm:$0xff]  ;;  %v292_v43 = vadd.f32 %v1124_v38, %v1121_v37  ;;  %v1139_v44 = vld [vmem:[%s1012_s6 + $0x80] sm:$0xff]  ;;  %v340_v46 = vld [vmem:[%s1624_s1 + $0x10] sm:$0xff] }
  0x39   : > { %376 = vmatpush.msra.mxu0 %v347_v12  ;;  %v357_v40 = vld [vmem:[%s1624_s1 + $0x98] sm:$0xff]  ;;  %v356_v47 = vld [vmem:[%s1624_s1 + $0x90] sm:$0xff]  ;;  %v1156_v51 = vld [vmem:[%s1012_s6 + $0x48] sm:$0xff] }
  0x3a   : > { %396 = vmatpush.msra.mxu1 %v363_v13  ;;  %v259_v35 = vadd.f32 %v258_v31, %v1098_v28  ;;  %v1142_v45 = vld [vmem:[%s1012_s6 + $0x38] sm:$0xff]  ;;  %v293_v49 = vadd.f32 %v292_v43, %v1134_v42  ;;  %v1153_v50 = vld [vmem:[%s1012_s6 + $0x90] sm:$0xff]  ;;  %v339_v52 = vld [vmem:[%s1624_s1 + $0x8] sm:$0xff] }
  0x3b   : > { %377 = vmatpush.msra.mxu0 %v346_v17  ;;  %v355_v53 = vld [vmem:[%s1624_s1 + $0x88] sm:$0xff]  ;;  %v1167_v56 = vld [vmem:[%s1012_s6 + $0xa0] sm:$0xff]  ;;  %v1170_v57 = vld [vmem:[%s1012_s6 + $0x58] sm:$0xff] }
  0x3c   : > { %397 = vmatpush.msra.mxu1 %v362_v18  ;;  %v260_v41 = vadd.f32 %v259_v35, %v1108_v32  ;;  %v294_v55 = vadd.f32 %v293_v49, %v1142_v45  ;;  %v338_v58 = vld [vmem:[%s1624_s1] sm:$0xff]  ;;  %v1181_v62 = vld [vmem:[%s1012_s6 + $0xb0] sm:$0xff]  ;;  %v1184_v63 = vld [vmem:[%s1012_s6 + $0x68] sm:$0xff] }
  0x3d   : > { %378 = vmatpush.msra.mxu0 %v345_v21  ;;  %v354_v59 = vld [vmem:[%s1624_s1 + $0x80] sm:$0xff]  ;;  %v1192_v3 = vld [vmem:[%s1012_s6 + $0x78] sm:$0xff]  ;;  %v1197_v6 = vld [vmem:[%s1012_s6 + $0xd0] sm:$0xff] }
  0x3e   : > { %398 = vmatpush.msra.mxu1 %v361_v22  ;;  %v261_v48 = vadd.f32 %v260_v41, %v1118_v36  ;;  %v295_v61 = vadd.f32 %v294_v55, %v1156_v51  ;;  %v1189_v2 = vld [vmem:[%s1012_s6 + $0xc0] sm:$0xff]  ;;  %v1200_v7 = vld [vmem:[%s1012_s6 + $0x88] sm:$0xff]  ;;  %v1208_v11 = vld [vmem:[%s1012_s6 + $0x98] sm:$0xff] }
  0x3f   : > { %379 = vmatpush.msra.mxu0 %v344_v25  ;;  %v1205_v10 = vld [vmem:[%s1012_s6 + $0xe0] sm:$0xff]  ;;  %v1213_v17 = vld [vmem:[%s1012_s6 + $0xf0] sm:$0xff]  ;;  %v1216_v18 = vld [vmem:[%s1012_s6 + $0xa8] sm:$0xff] }
  0x40   : > { %399 = vmatpush.msra.mxu1 %v360_v26  ;;  %v262_v54 = vadd.f32 %v261_v48, %v1139_v44  ;;  %v296_v1 = vadd.f32 %v295_v61, %v1170_v57  ;;  %1651 = vst [vmem:[#allocation8_spill] sm:$0xff] %v1216_v18  ;;  %v1221_v22 = vld [vmem:[%s1012_s6 + $0x100] sm:$0xff]  ;;  %v1224_v23 = vld [vmem:[%s1012_s6 + $0xb8] sm:$0xff]  ;;  %v1229_v27 = vld [vmem:[%s1012_s6 + $0x110] sm:$0xff] }
  0x41   : > { %380 = vmatpush.msra.mxu0 %v343_v29  ;;  %1652 = vst [vmem:[#allocation9_spill] sm:$0xff] %v1224_v23  ;;  %v1232_v29 = vld [vmem:[%s1012_s6 + $0xc8] sm:$0xff]  ;;  %v1256_v48 = vld [vmem:[%s1012_s6 + $0xf8] sm:$0xff] }
  0x42   : > { %400 = vmatpush.msra.mxu1 %v359_v30  ;;  %v263_v60 = vadd.f32 %v262_v54, %v1153_v50  ;;  %v297_v5 = vadd.f32 %v296_v1, %v1184_v63  ;;  %1653 = vst [vmem:[#allocation10_spill] sm:$0xff] %v1232_v29  ;;  %v1248_v41 = vld [vmem:[%s1012_s6 + $0xe8] sm:$0xff]  ;;  %v1277_v1 = vld [vmem:[%s1012_s6 + $0x170] sm:$0xff] }
  0x43   : > { %381 = vmatpush.msra.mxu0 %v342_v33  ;;  %v1237_v33 = vld [vmem:[%s1012_s6 + $0x120] sm:$0xff]  ;;  %1655 = vst [vmem:[#allocation12_spill] sm:$0xff] %v1248_v41  ;;  %v1264_v54 = vld [vmem:[%s1012_s6 + $0x108] sm:$0xff] }
  0x44   : > { %401 = vmatpush.msra.mxu1 %v358_v34  ;;  %v264_v0 = vadd.f32 %v263_v60, %v1167_v56  ;;  %v298_v9 = vadd.f32 %v297_v5, %v1192_v3  ;;  %v1240_v34 = vld [vmem:[%s1012_s6 + $0xd8] sm:$0xff]  ;;  %1656 = vst [vmem:[#allocation13_spill] sm:$0xff] %v1256_v48 }
  0x45   : > { %382 = vmatpush.msra.mxu0 %v341_v39  ;;  %1654 = vst [vmem:[#allocation11_spill] sm:$0xff] %v1240_v34  ;;  %v1272_v60 = vld [vmem:[%s1012_s6 + $0x118] sm:$0xff] }
  0x46   : > { %402 = vmatpush.msra.mxu1 %v357_v40  ;;  %v265_v4 = vadd.f32 %v264_v0, %v1181_v62  ;;  %v299_v13 = vadd.f32 %v298_v9, %v1200_v7  ;;  %v1245_v40 = vld [vmem:[%s1012_s6 + $0x130] sm:$0xff]  ;;  %1657 = vst [vmem:[#allocation14_spill] sm:$0xff] %v1264_v54  ;;  %v1285_v9 = vld [vmem:[%s1012_s6 + $0x180] sm:$0xff] }
  0x47   : > { %383 = vmatpush.msra.mxu0 %v340_v46  ;;  %1658 = vst [vmem:[#allocation15_spill] sm:$0xff] %v1272_v60 }
  0x48   : > { %403 = vmatpush.msra.mxu1 %v356_v47  ;;  %v266_v8 = vadd.f32 %v265_v4, %v1189_v2  ;;  %v300_v21 = vadd.f32 %v299_v13, %v1208_v11  ;;  %v1253_v47 = vld [vmem:[%s1012_s6 + $0x140] sm:$0xff]  ;;  %v1280_v4 = vld [vmem:[%s1012_s6 + $0x128] sm:$0xff] }
  0x49   : > { %384 = vmatpush.msra.mxu0 %v339_v52  ;;  %1659 = vst [vmem:[#allocation16_spill] sm:$0xff] %v1280_v4 }
  0x4a   : > { %404 = vmatpush.msra.mxu1 %v355_v53  ;;  %v267_v12 = vadd.f32 %v266_v8, %v1197_v6  ;;  %v301_v26 = vadd.f32 %v300_v21, %v1216_v18  ;;  %v1261_v53 = vld [vmem:[%s1012_s6 + $0x150] sm:$0xff] }
  0x4b   : > { %385 = vmatpush.msra.mxu0 %v338_v58  ;;  %v1293_v21 = vld [vmem:[%s1012_s6 + $0x190] sm:$0xff] }
  0x4c   : > { %405 = vmatpush.msra.mxu1 %v354_v59  ;;  %v268_v19 = vadd.f32 %v267_v12, %v1205_v10  ;;  %v302_v31 = vadd.f32 %v301_v26, %v1224_v23  ;;  %v1269_v59 = vld [vmem:[%s1012_s6 + $0x160] sm:$0xff]  ;;  %v1288_v12 = vld [vmem:[%s1012_s6 + $0x138] sm:$0xff] }
  0x4d   : > { %1660 = vst [vmem:[#allocation17_spill] sm:$0xff] %v1288_v12 }
  0x4e   : > { %v269_v25 = vadd.f32 %v268_v19, %v1213_v17  ;;  %v303_v39 = vadd.f32 %v302_v31, %v1232_v29 }
  0x50   : > { %v270_v30 = vadd.f32 %v269_v25, %v1221_v22  ;;  %v304_v46 = vadd.f32 %v303_v39, %v1240_v34  ;;  %v1296_v25 = vld [vmem:[%s1012_s6 + $0x148] sm:$0xff]  ;;  %v1304_v39 = vld [vmem:[%s1012_s6 + $0x158] sm:$0xff] }
  0x51   : > { %1661 = vst [vmem:[#allocation18_spill] sm:$0xff] %v1296_v25 }
  0x52   : > { %v271_v35 = vadd.f32 %v270_v30, %v1229_v27  ;;  %v305_v52 = vadd.f32 %v304_v46, %v1248_v41  ;;  %v897_v30 = vmov 256.0   ;;  %1662 = vst [vmem:[#allocation19_spill] sm:$0xff] %v1304_v39 }
  0x53   : > { %787 = vrcp.f32 %v897_v30 }
  0x54   : > { %v272_v43 = vadd.f32 %v271_v35, %v1237_v33  ;;  %v306_v58 = vadd.f32 %v305_v52, %v1256_v48  ;;  %v1301_v35 = vld [vmem:[%s1012_s6 + $0x1a0] sm:$0xff]  ;;  %v1312_v52 = vld [vmem:[%s1012_s6 + $0x168] sm:$0xff]  ;;  %v1358_v48 = vld [vmem:[%s1012_s6 + $0x1d8] sm:$0xff] }
  0x55   : > { %1663 = vst [vmem:[#allocation20_spill] sm:$0xff] %v1312_v52 }
  0x56   : > { %v273_v49 = vadd.f32 %v272_v43, %v1245_v40  ;;  %v307_v0 = vadd.f32 %v306_v58, %v1264_v54 }
  0x58   : > { %v274_v55 = vadd.f32 %v273_v49, %v1253_v47  ;;  %v308_v8 = vadd.f32 %v307_v0, %v1272_v60  ;;  %v1309_v49 = vld [vmem:[%s1012_s6 + $0x1b0] sm:$0xff]  ;;  %v1320_v0 = vld [vmem:[%s1012_s6 + $0x178] sm:$0xff] }
  0x59   : > { %1664 = vst [vmem:[#allocation21_spill] sm:$0xff] %v1320_v0 }
  0x5a   : > { %v275_v61 = vadd.f32 %v274_v55, %v1261_v53  ;;  %v309_v19 = vadd.f32 %v308_v8, %v1280_v4 }
  0x5c   : > { %v276_v5 = vadd.f32 %v275_v61, %v1269_v59  ;;  %v310_v31 = vadd.f32 %v309_v19, %v1288_v12  ;;  %v1317_v61 = vld [vmem:[%s1012_s6 + $0x1c0] sm:$0xff]  ;;  %v1325_v19 = vld [vmem:[%s1012_s6 + $0x1d0] sm:$0xff] }
  0x5e   : > { %v277_v13 = vadd.f32 %v276_v5, %v1277_v1  ;;  %v311_v46 = vadd.f32 %v310_v31, %v1296_v25  ;;  %v788_v5 = vpop.eup %787 }
  0x5f   : > { %vm334_vm0 = vweird.f32 %v788_v5 }
  0x60   : > { %v278_v26 = vadd.f32 %v277_v13, %v1285_v9  ;;  %v312_v58 = vadd.f32 %v311_v46, %v1304_v39  ;;  %v330_v46 = vmul.f32 256.0, %v788_v5  ;;  %v1336_v39 = vld [vmem:[%s1012_s6 + $0x198] sm:$0xff] }
  0x61   : > { %1666 = vst [vmem:[#allocation23_spill] sm:$0xff] %v1336_v39 }
  0x62   : > { %v279_v43 = vadd.f32 %v278_v26, %v1293_v21  ;;  %v313_v13 = vadd.f32 %v312_v58, %v1312_v52  ;;  %v1328_v26 = vld [vmem:[%s1012_s6 + $0x188] sm:$0xff]  ;;  %v1341_v58 = vld [vmem:[%s1012_s6 + $0x1f0] sm:$0xff] }
  0x63   : > { %1665 = vst [vmem:[#allocation22_spill] sm:$0xff] %v1328_v26  ;;  %v1344_v52 = vld [vmem:[%s1012_s6 + $0x1a8] sm:$0xff] }
  0x64   : > { %v280_v55 = vadd.f32 %v279_v43, %v1301_v35  ;;  %v314_v31 = vadd.f32 %v313_v13, %v1320_v0  ;;  %v1333_v43 = vld [vmem:[%s1012_s6 + $0x1e0] sm:$0xff]  ;;  %1667 = vst [vmem:[#allocation24_spill] sm:$0xff] %v1344_v52  ;;  %v331_v13 = vsub.f32 1.0, %v330_v46  ;;  %v1349_v0 = vld [vmem:[%s1012_s6 + $0x1b8] sm:$0xff] }
  0x65   : > { %1668 = vst [vmem:[#allocation25_spill] sm:$0xff] %v1349_v0 }
  0x66   : > { %v281_v8 = vadd.f32 %v280_v55, %v1309_v49  ;;  %v315_v25 = vadd.f32 %v314_v31, %v1328_v26  ;;  %v332_v54 = vmul.f32 %v788_v5, %v331_v13 }
  0x68   : > { %v282_v30 = vadd.f32 %v281_v8, %v1317_v61  ;;  %v316_v8 = vadd.f32 %v315_v25, %v1336_v39  ;;  %v1362_v25 = vld [vmem:[%s1012_s6 + $0x1e8] sm:$0xff]  ;;  %v333_v34 = vadd.f32 %v788_v5, %v332_v54 }
  0x6a   : > { %v283_v55 = vadd.f32 %v282_v30, %v1325_v19  ;;  %v317_v60 = vadd.f32 %v316_v8, %v1344_v52  ;;  %v1354_v30 = vld [vmem:[%s1012_s6 + $0x1c8] sm:$0xff]  ;;  %v335_v13 = vsel %vm334_vm0, %v788_v5, %v333_v34 }
  0x6b   : > { %1669 = vst [vmem:[#allocation26_spill] sm:$0xff] %v1354_v30 }
  0x6c   : > { %v284_v12 = vadd.f32 %v283_v55, %v1333_v43  ;;  %v318_v26 = vadd.f32 %v317_v60, %v1349_v0 }
  0x6e   : > { %v285_v4 = vadd.f32 %v284_v12, %v1341_v58  ;;  %v319_v55 = vadd.f32 %v318_v26, %v1354_v30  ;;  %v1366_v12 = vld [vmem:[%s1012_s6 + $0x1f8] sm:$0xff] }
  0x70   : > { %v286_v31 = vrot.slane %v285_v4, 4  ;;  %v320_v39 = vadd.f32 %v319_v55, %v1358_v48 }
  0x72   : > { %v287_v41 = vadd.f32 %v286_v31, %v285_v4  ;;  %v321_v52 = vadd.f32 %v320_v39, %v1362_v25  ;;  %v414_v39 = vld [vmem:[%s1625_s2 + $0x18] sm:$0xff] }
  0x73   : > { %453 = vmatpush.msra.mxu3 %v414_v39 }
  0x74   : > { %v288_v46 = vrot.slane %v287_v41, 2  ;;  %v322_v60 = vadd.f32 %v321_v52, %v1366_v12 }
  0x76   : > { %v289_v8 = vadd.f32 %v288_v46, %v287_v41  ;;  %v323_v4 = vrot.slane %v322_v60, 4  ;;  %v413_v41 = vld [vmem:[%s1625_s2 + $0x10] sm:$0xff] }
  0x77   : > { %433 = vmatpush.msra.mxu2 %v413_v41 }
  0x78   : > { %v290_v29 = vrot.slane %v289_v8, 1  ;;  %v324_v26 = vadd.f32 %v323_v4, %v322_v60 }
  0x7a   : > { %v291_v0 = vadd.f32 %v290_v29, %v289_v8  ;;  %v325_v30 = vrot.slane %v324_v26, 2  ;;  %v411_v29 = vld [vmem:[%s1625_s2] sm:$0xff] }
  0x7b   : > { %434 = vmatpush.msra.mxu2 %v411_v29 }
  0x7c   : > { %v336_v31 = vmul.f32 %v335_v13, %v291_v0  ;;  %v326_v23 = vadd.f32 %v325_v30, %v324_v26 }
  0x7e   : > { %386 = vmatmul.f32.vlgmr.msra.gmra.mxu0 %v336_v31  ;;  %v327_v18 = vrot.slane %v326_v23, 1 }
  0x80   : > { %v328_v55 = vadd.f32 %v327_v18, %v326_v23  ;;  %v412_v18 = vld [vmem:[%s1625_s2 + $0x8] sm:$0xff] }
  0x81   : > { %454 = vmatpush.msra.mxu3 %v412_v18 }
  0x82   : > { %v337_v54 = vmul.f32 %v335_v13, %v328_v55 }
  0x84   : > { %406 = vmatmul.f32.vlgmr.msra.gmra.mxu1 %v337_v54 }
  0xfb   : > { %v387_v23 = vpop.f32.mrf.mxu0 }
 0x101   : > { %v407_v34 = vpop.f32.mrf.mxu1 }
 0x102   : > { %v408_v52 = vadd.f32 %v407_v34, %v387_v23 }
 0x104   : > { %v410_v0 = vmax.f32 %v408_v52, 0.0 }
 0x106   : > { %725 = vmatmul.msk.f32.vlgmr.msra.gmra.mxu2 %vm415_vm1, %v410_v0  ;;  %726 = vmatmul.msk.f32.vlgmr.msra.gmra.mxu3 %vm415_vm1, %v410_v0 }
 0x189   : > { %v436_v5 = vpop.f32.mrf.mxu2  ;;  %v456_v46 = vpop.f32.mrf.mxu3 }
 0x18a   : > { %v727_v30 = vmul.f32 -1.442695, %v436_v5  ;;  %v728_v60 = vmul.f32 -1.442695, %v456_v46 }
 0x18c   : > { %789 = vpow2.f32 %v727_v30 }
 0x192   : > { %v790_v8 = vpop.eup %789 }
 0x193   : > { %v465_v13 = vadd.f32 1.0, %v790_v8 }
 0x195   : > { %791 = vrcp.f32 %v465_v13  ;;  %v478_v54 = vand.u32 2147483648, %v465_v13  ;;  %v476_v29 = vand.u32 2147483647, %v465_v13  ;;  %vm472_vm3 = vweird.f32 %v465_v13 }
 0x196   : > { %793 = vpow2.f32 %v728_v60 }
 0x197   : > { %v479_v23 = vor.u32 1.1754944e-38, %v478_v54  ;;  %vm477_vm5 = vcmp.eq.f32.partialorder %v476_v29, 8.507059e+37 }
 0x19b   : > { %v792_v4 = vpop.eup %791 }
 0x19c   : > { %v794_v31 = vpop.eup %793  ;;  %v468_v26 = vmul.f32 %v792_v4, %v465_v13  ;;  %vm473_vm2 = vweird.f32 %v792_v4 }
 0x19d   : > { %v1382_v41 = vadd.f32 1.0, %v794_v31  ;;  %vm474_vm4 = vmor %vm472_vm3, %vm473_vm2 }
 0x19e   : > { %v469_v55 = vsub.f32 1.0, %v468_v26 }
 0x19f   : > { %795 = vrcp.f32 %v1382_v41  ;;  %vm487_vm7 = vweird.f32 %v1382_v41 }
 0x1a0   : > { %v470_v39 = vmul.f32 %v792_v4, %v469_v55  ;;  %v493_v55 = vand.u32 2147483648, %v1382_v41 }
 0x1a2   : > { %v471_v18 = vadd.f32 %v792_v4, %v470_v39  ;;  %v494_v39 = vor.u32 1.1754944e-38, %v493_v55 }
 0x1a4   : > { %v475_v34 = vsel %vm474_vm4, %v792_v4, %v471_v18 }
 0x1a5   : > { %v480_v52 = vsel %vm477_vm5, %v479_v23, %v475_v34  ;;  %v796_v8 = vpop.eup %795  ;;  %v1670_v23 = vld [vmem:[#allocation8_spill] sm:$0xff]  ;;  %v1671_v34 = vld [vmem:[#allocation9_spill] sm:$0xff] }
 0x1a6   : > { %v1385_v0 = vperm.slane %v480_v52, 0  ;;  %vm488_vm6 = vweird.f32 %v796_v8  ;;  %v1672_v52 = vld [vmem:[#allocation10_spill] sm:$0xff] }
 0x1a7   : > { %vm489_vm8 = vmor %vm487_vm7, %vm488_vm6 }
 0x1a8   : > { %v499_v5 = vmul.f32 %v1385_v0, %v1061_v14  ;;  %v501_v30 = vmul.f32 %v1385_v0, %v1064_v15  ;;  %v503_v46 = vmul.f32 %v1385_v0, %v1067_v16  ;;  %v505_v60 = vmul.f32 %v1385_v0, %v1078_v20 }
 0x1a9   : > { %v507_v13 = vmul.f32 %v1385_v0, %v1088_v24  ;;  %v509_v14 = vmul.f32 %v1385_v0, %v1098_v28  ;;  %v511_v15 = vmul.f32 %v1385_v0, %v1108_v32  ;;  %v483_v16 = vmul.f32 %v796_v8, %v1382_v41 }
 0x1aa   : > { %563 = vst [vmem:[%s1399_s27] sm:$0xff] %v499_v5  ;;  %v513_v20 = vmul.f32 %v1385_v0, %v1118_v36  ;;  %v515_v24 = vmul.f32 %v1385_v0, %v1139_v44  ;;  %v517_v28 = vmul.f32 %v1385_v0, %v1153_v50  ;;  %v519_v32 = vmul.f32 %v1385_v0, %v1167_v56  ;;  %v1674_v5 = vld [vmem:[#allocation12_spill] sm:$0xff] }
 0x1ab   : > { %565 = vst [vmem:[%s1399_s27 + $0x10] sm:$0xff] %v501_v30  ;;  %v484_v4 = vsub.f32 1.0, %v483_v16  ;;  %v521_v36 = vmul.f32 %v1385_v0, %v1181_v62  ;;  %v523_v44 = vmul.f32 %v1385_v0, %v1189_v2  ;;  %v525_v50 = vmul.f32 %v1385_v0, %v1197_v6  ;;  %v1678_v16 = vld [vmem:[#allocation16_spill] sm:$0xff] }
 0x1ac   : > { %567 = vst [vmem:[%s1399_s27 + $0x20] sm:$0xff] %v503_v46  ;;  %v527_v56 = vmul.f32 %v1385_v0, %v1205_v10  ;;  %v529_v26 = vmul.f32 %v1385_v0, %v1213_v17  ;;  %v531_v62 = vmul.f32 %v1385_v0, %v1221_v22  ;;  %v533_v2 = vmul.f32 %v1385_v0, %v1229_v27  ;;  %v1675_v46 = vld [vmem:[#allocation13_spill] sm:$0xff] }
 0x1ad   : > { %569 = vst [vmem:[%s1399_s27 + $0x30] sm:$0xff] %v505_v60  ;;  %v485_v31 = vmul.f32 %v796_v8, %v484_v4  ;;  %v535_v6 = vmul.f32 %v1385_v0, %v1237_v33  ;;  %v537_v17 = vmul.f32 %v1385_v0, %v1245_v40  ;;  %v539_v22 = vmul.f32 %v1385_v0, %v1253_v47  ;;  %v1676_v60 = vld [vmem:[#allocation14_spill] sm:$0xff] }
 0x1ae   : > { %571 = vst [vmem:[%s1399_s27 + $0x40] sm:$0xff] %v507_v13  ;;  %v491_v27 = vand.u32 2147483647, %v1382_v41  ;;  %v541_v33 = vmul.f32 %v1385_v0, %v1261_v53  ;;  %v543_v40 = vmul.f32 %v1385_v0, %v1269_v59  ;;  %v545_v47 = vmul.f32 %v1385_v0, %v1277_v1 }
 0x1af   : > { %573 = vst [vmem:[%s1399_s27 + $0x50] sm:$0xff] %v509_v14  ;;  %v486_v10 = vadd.f32 %v796_v8, %v485_v31  ;;  %v547_v41 = vmul.f32 %v1385_v0, %v1285_v9  ;;  %v549_v53 = vmul.f32 %v1385_v0, %v1293_v21  ;;  %v551_v29 = vmul.f32 %v1385_v0, %v1301_v35  ;;  %v1677_v14 = vld [vmem:[#allocation15_spill] sm:$0xff]  ;;  %v1683_v31 = vld [vmem:[#allocation21_spill] sm:$0xff] }
 0x1b0   : > { %575 = vst [vmem:[%s1399_s27 + $0x60] sm:$0xff] %v511_v15  ;;  %vm492_vm9 = vcmp.eq.f32.partialorder %v491_v27, 8.507059e+37  ;;  %v553_v1 = vmul.f32 %v1385_v0, %v1309_v49  ;;  %v555_v9 = vmul.f32 %v1385_v0, %v1317_v61  ;;  %v557_v21 = vmul.f32 %v1385_v0, %v1325_v19 }
 0x1b1   : > { %577 = vst [vmem:[%s1399_s27 + $0x70] sm:$0xff] %v513_v20  ;;  %v490_v54 = vsel %vm489_vm8, %v796_v8, %v486_v10  ;;  %v559_v35 = vmul.f32 %v1385_v0, %v1333_v43  ;;  %v561_v49 = vmul.f32 %v1385_v0, %v1341_v58  ;;  %v1673_v0 = vld [vmem:[#allocation11_spill] sm:$0xff] }
 0x1b2   : > { %579 = vst [vmem:[%s1399_s27 + $0x80] sm:$0xff] %v515_v24  ;;  %v495_v59 = vsel %vm492_vm9, %v494_v39, %v490_v54  ;;  %v1679_v24 = vld [vmem:[#allocation17_spill] sm:$0xff] }
 0x1b3   : > { %581 = vst [vmem:[%s1399_s27 + $0x90] sm:$0xff] %v517_v28  ;;  %v1477_v18 = vperm.slane %v495_v59, 0 }
 0x1b4   : > { %583 = vst [vmem:[%s1399_s27 + $0xa0] sm:$0xff] %v519_v32  ;;  %v1680_v32 = vld [vmem:[#allocation18_spill] sm:$0xff] }
 0x1b5   : > { %585 = vst [vmem:[%s1399_s27 + $0xb0] sm:$0xff] %v521_v36  ;;  %v500_v61 = vmul.f32 %v1477_v18, %v1121_v37  ;;  %v502_v19 = vmul.f32 %v1477_v18, %v1124_v38  ;;  %v504_v43 = vmul.f32 %v1477_v18, %v1134_v42  ;;  %v506_v58 = vmul.f32 %v1477_v18, %v1142_v45  ;;  %v1681_v36 = vld [vmem:[#allocation19_spill] sm:$0xff] }
 0x1b6   : > { %587 = vst [vmem:[%s1399_s27 + $0xc0] sm:$0xff] %v523_v44  ;;  %v508_v37 = vmul.f32 %v1477_v18, %v1156_v51  ;;  %v510_v38 = vmul.f32 %v1477_v18, %v1170_v57  ;;  %v512_v42 = vmul.f32 %v1477_v18, %v1184_v63  ;;  %v514_v45 = vmul.f32 %v1477_v18, %v1192_v3 }
 0x1b7   : > { %589 = vst [vmem:[%s1399_s27 + $0xd0] sm:$0xff] %v525_v50  ;;  %v516_v51 = vmul.f32 %v1477_v18, %v1200_v7  ;;  %v518_v57 = vmul.f32 %v1477_v18, %v1208_v11  ;;  %v520_v63 = vmul.f32 %v1477_v18, %v1670_v23  ;;  %v522_v3 = vmul.f32 %v1477_v18, %v1671_v34  ;;  %v1682_v50 = vld [vmem:[#allocation20_spill] sm:$0xff] }
 0x1b8   : > { %591 = vst [vmem:[%s1399_s27 + $0xe0] sm:$0xff] %v527_v56  ;;  %v524_v7 = vmul.f32 %v1477_v18, %v1672_v52  ;;  %v526_v11 = vmul.f32 %v1477_v18, %v1673_v0  ;;  %v528_v30 = vmul.f32 %v1477_v18, %v1674_v5  ;;  %v530_v8 = vmul.f32 %v1477_v18, %v1675_v46 }
 0x1b9   : > { %593 = vst [vmem:[%s1399_s27 + $0xf0] sm:$0xff] %v529_v26  ;;  %v532_v13 = vmul.f32 %v1477_v18, %v1676_v60  ;;  %v534_v15 = vmul.f32 %v1477_v18, %v1677_v14  ;;  %v536_v20 = vmul.f32 %v1477_v18, %v1678_v16  ;;  %v538_v28 = vmul.f32 %v1477_v18, %v1679_v24 }
 0x1ba   : > { %595 = vst [vmem:[%s1399_s27 + $0x100] sm:$0xff] %v531_v62  ;;  %v540_v4 = vmul.f32 %v1477_v18, %v1680_v32  ;;  %v542_v44 = vmul.f32 %v1477_v18, %v1681_v36  ;;  %v544_v56 = vmul.f32 %v1477_v18, %v1682_v50  ;;  %v546_v26 = vmul.f32 %v1477_v18, %v1683_v31  ;;  %v1684_v62 = vld [vmem:[#allocation22_spill] sm:$0xff] }
 0x1bb   : > { %597 = vst [vmem:[%s1399_s27 + $0x110] sm:$0xff] %v533_v2  ;;  %v548_v2 = vmul.f32 %v1477_v18, %v1684_v62  ;;  %v558_v54 = vmul.f32 %v1477_v18, %v1358_v48  ;;  %v562_v39 = vmul.f32 %v1477_v18, %v1366_v12 }
 0x1bc   : > { %599 = vst [vmem:[%s1399_s27 + $0x120] sm:$0xff] %v535_v6  ;;  %v1685_v6 = vld [vmem:[#allocation23_spill] sm:$0xff] }
 0x1bd   : > { %601 = vst [vmem:[%s1399_s27 + $0x130] sm:$0xff] %v537_v17  ;;  %v550_v10 = vmul.f32 %v1477_v18, %v1685_v6  ;;  %v1686_v17 = vld [vmem:[#allocation24_spill] sm:$0xff] }
 0x1be   : > { %603 = vst [vmem:[%s1399_s27 + $0x140] sm:$0xff] %v539_v22  ;;  %v552_v55 = vmul.f32 %v1477_v18, %v1686_v17  ;;  %v1687_v22 = vld [vmem:[#allocation25_spill] sm:$0xff] }
 0x1bf   : > { %605 = vst [vmem:[%s1399_s27 + $0x150] sm:$0xff] %v541_v33  ;;  %v554_v27 = vmul.f32 %v1477_v18, %v1687_v22  ;;  %v1688_v33 = vld [vmem:[#allocation26_spill] sm:$0xff] }
 0x1c0   : > { %607 = vst [vmem:[%s1399_s27 + $0x160] sm:$0xff] %v543_v40  ;;  %v556_v40 = vmul.f32 %v1477_v18, %v1688_v33 }
 0x1c1   : > { %609 = vst [vmem:[%s1399_s27 + $0x170] sm:$0xff] %v545_v47  ;;  %v560_v47 = vmul.f32 %v1477_v18, %v1362_v25 }
 0x1c2   : > { %611 = vst [vmem:[%s1399_s27 + $0x180] sm:$0xff] %v547_v41 }
 0x1c3   : > { %613 = vst [vmem:[%s1399_s27 + $0x190] sm:$0xff] %v549_v53 }
 0x1c4   : > { %615 = vst [vmem:[%s1399_s27 + $0x1a0] sm:$0xff] %v551_v29 }
 0x1c5   : > { %617 = vst [vmem:[%s1399_s27 + $0x1b0] sm:$0xff] %v553_v1 }
 0x1c6   : > { %619 = vst [vmem:[%s1399_s27 + $0x1c0] sm:$0xff] %v555_v9 }
 0x1c7   : > { %621 = vst [vmem:[%s1399_s27 + $0x1d0] sm:$0xff] %v557_v21 }
 0x1c8   : > { %623 = vst [vmem:[%s1399_s27 + $0x1e0] sm:$0xff] %v559_v35 }
 0x1c9   : > { %625 = vst [vmem:[%s1399_s27 + $0x1f0] sm:$0xff] %v561_v49 }
 0x1ca   : > { %564 = vst [vmem:[%s1399_s27 + $0x8] sm:$0xff] %v500_v61 }
 0x1cb   : > { %566 = vst [vmem:[%s1399_s27 + $0x18] sm:$0xff] %v502_v19 }
 0x1cc   : > { %568 = vst [vmem:[%s1399_s27 + $0x28] sm:$0xff] %v504_v43 }
 0x1cd   : > { %570 = vst [vmem:[%s1399_s27 + $0x38] sm:$0xff] %v506_v58 }
 0x1ce   : > { %572 = vst [vmem:[%s1399_s27 + $0x48] sm:$0xff] %v508_v37 }
 0x1cf   : > { %574 = vst [vmem:[%s1399_s27 + $0x58] sm:$0xff] %v510_v38 }
 0x1d0   : > { %576 = vst [vmem:[%s1399_s27 + $0x68] sm:$0xff] %v512_v42 }
 0x1d1   : > { %578 = vst [vmem:[%s1399_s27 + $0x78] sm:$0xff] %v514_v45 }
 0x1d2   : > { %580 = vst [vmem:[%s1399_s27 + $0x88] sm:$0xff] %v516_v51 }
 0x1d3   : > { %582 = vst [vmem:[%s1399_s27 + $0x98] sm:$0xff] %v518_v57 }
 0x1d4   : > { %584 = vst [vmem:[%s1399_s27 + $0xa8] sm:$0xff] %v520_v63 }
 0x1d5   : > { %586 = vst [vmem:[%s1399_s27 + $0xb8] sm:$0xff] %v522_v3 }
 0x1d6   : > { %588 = vst [vmem:[%s1399_s27 + $0xc8] sm:$0xff] %v524_v7 }
 0x1d7   : > { %590 = vst [vmem:[%s1399_s27 + $0xd8] sm:$0xff] %v526_v11 }
 0x1d8   : > { %592 = vst [vmem:[%s1399_s27 + $0xe8] sm:$0xff] %v528_v30 }
 0x1d9   : > { %594 = vst [vmem:[%s1399_s27 + $0xf8] sm:$0xff] %v530_v8 }
 0x1da   : > { %596 = vst [vmem:[%s1399_s27 + $0x108] sm:$0xff] %v532_v13 }
 0x1db   : > { %598 = vst [vmem:[%s1399_s27 + $0x118] sm:$0xff] %v534_v15 }
 0x1dc   : > { %600 = vst [vmem:[%s1399_s27 + $0x128] sm:$0xff] %v536_v20 }
 0x1dd   : > { %602 = vst [vmem:[%s1399_s27 + $0x138] sm:$0xff] %v538_v28 }
 0x1de   : > { %604 = vst [vmem:[%s1399_s27 + $0x148] sm:$0xff] %v540_v4 }
 0x1df   : > { %606 = vst [vmem:[%s1399_s27 + $0x158] sm:$0xff] %v542_v44 }
 0x1e0   : > { %608 = vst [vmem:[%s1399_s27 + $0x168] sm:$0xff] %v544_v56 }
 0x1e1   : > { %610 = vst [vmem:[%s1399_s27 + $0x178] sm:$0xff] %v546_v26 }
 0x1e2   : > { %612 = vst [vmem:[%s1399_s27 + $0x188] sm:$0xff] %v548_v2 }
 0x1e3   : > { %614 = vst [vmem:[%s1399_s27 + $0x198] sm:$0xff] %v550_v10 }
 0x1e4   : > { %616 = vst [vmem:[%s1399_s27 + $0x1a8] sm:$0xff] %v552_v55 }
 0x1e5   : > { %618 = vst [vmem:[%s1399_s27 + $0x1b8] sm:$0xff] %v554_v27 }
 0x1e6   : > { %620 = vst [vmem:[%s1399_s27 + $0x1c8] sm:$0xff] %v556_v40 }
 0x1e7   : > { %622 = vst [vmem:[%s1399_s27 + $0x1d8] sm:$0xff] %v558_v54 }
 0x1e8   : > { %624 = vst [vmem:[%s1399_s27 + $0x1e8] sm:$0xff] %v560_v47 }
 0x1e9   : > { %626 = vst [vmem:[%s1399_s27 + $0x1f8] sm:$0xff] %v562_v39 }
 0x1ea   : > { %854 = shalt.err (!%p851_p4)
}
 0x1eb   : > { %s898_s29 = smov 256   ;;  %s899_s23 = smov 16  }
 0x1ec   : > { %738 = dma.vmem_to_hbm [thread:$0]  (%p970_p11), %s641_s16, 8192, %s643_s5, %s628_s7, %s898_s29, %s898_s29, %s899_s23  }
 0x1ed PF: > { %s657_s20 = sand.u32 1, %s881_s12   ;;  %p1689_p7 = scmp.ge.s32.totalorder %s893_s15, 2 }
 0x1ee   : > { %s658_s22 = scalar_lea.sflag [#allocation4], %s657_s20 }
 0x1ef   : > { %p745_p5 = pnand %p1689_p7, %p974_p12 }
 0x1f1   : > { %p746_p8 = pneg %p745_p5 }
 0x1f3   : > { %876 = dma.done.wait (%p746_p8), %s658_s22, 8192  }
 0x1f4   : > { %878 = vsyncadd (%p746_p8), %s658_s22, 4294959104  ;;  %p16_p10 = scmp.ge.s32.totalorder %s945_s18, 4   ;;  %s1690_s12 = smov %s885_s13 }
 0x1f5   : > { %s1691_s13 = smov %s889_s14  ;;  %s1692_s14 = smov %s957_s21 }
 0x1f6   : > { %s1693_s15 = smov %s945_s18  ;;  %18 = sbr.rel (!%p16_p10) target bundleno = 5 (0x5), region = 77 }
 0x1fb   :  { %664 = vsyncpa [#allocation3], 1 }
 0x1fc   :  { %666 = vsyncpa [#allocation3 + $0x1], 1 }
 0x1fd   :  { %667 = vsyncpa [#allocation4], 1 }
 0x1fe   :  { %669 = vsyncpa [#allocation4 + $0x1], 1 }

</bundles_post_ra>
